<compile_context>
chip_gen: v5e
topology: v5e:2x2
jax: 0.10.0
libtpu: 0.0.40
codegen_flags: <defaults>
</compile_context>

<pallas_src>
import jax
import jax.numpy as jnp
from jax import lax
from jax.experimental import pallas as pl
from jax.experimental.pallas import tpu as pltpu


def intergate_kernel(latent_ref, refined_ref, w4_ref, b4_ref, w5_ref, b5_ref,
                     out_ref, l_ext_ref):
    f32 = jnp.float32
    bf16 = jnp.bfloat16
    C = w4_ref.shape[0]
    N = latent_ref.shape[-1]

    # ---- L-cache: w4 @ latent + b4 computed once per batch element (first query
    # tile only) and kept resident in VMEM (bf16) for all query tiles of that
    # batch.  The extra ones row makes the softmax denominator fall out of the
    # attention matmul for free (extra MXU output row).  Requires the q grid
    # axis to be "arbitrary" (not megacore-sharded).
    @pl.when(pl.program_id(1) == 0)
    def _():
        lat = latent_ref[...].astype(f32)                                   # (C, N)
        L = jnp.dot(w4_ref[...].astype(f32), lat,
                    preferred_element_type=f32) + b4_ref[...]               # (C, N) f32
        l_ext_ref[pl.ds(0, C), :] = L.astype(bf16)
        l_ext_ref[pl.ds(C, 1), :] = jnp.ones((1, N), dtype=bf16)

    ref_bf = refined_ref[...].astype(bf16)                                  # (C, TQ)
    l_bf = l_ext_ref[pl.ds(0, C), :]                                        # (C, N) bf16

    # Attention logits: contract over channels WITHOUT materializing L^T
    # (transposed-LHS MXU matmul -> no XLU transpose, no (N, C) temporary).
    # Keys on the sublane axis, queries on the lane axis, so softmax stats are
    # (1, TQ) rows that broadcast straight onto the (C, TQ) result.
    # TODO(synk): if production C stays tiny (< ~32), consider a VPU
    # multiply-add path / channel packing instead of MXU calls.
    scores = lax.dot_general(
        l_bf, ref_bf, dimension_numbers=(((0,), (0,)), ((), ())),
        preferred_element_type=f32)                                         # (N, TQ) f32

    # Softmax statistics stay in f32; normalization is deferred past the
    # attention matmul and its denominator is folded into that matmul.
    m = jnp.max(scores, axis=0, keepdims=True)                              # (1, TQ)
    # TODO(synk): on v6e/v7x, do the exp in bf16 if profiling shows EUP saturating.
    p = jnp.exp(scores - m)                                                 # (N, TQ) f32
    p_bf = p.astype(bf16)                                                   # halve the big MXU operand

    # (C+1, N) @ (N, TQ): rows 0..C-1 = L @ p (mixed values), row C = sum_k p.
    mixed_ext = jnp.dot(l_ext_ref[...], p_bf,
                        preferred_element_type=f32)                         # (C+1, TQ) f32
    inv = pl.reciprocal(mixed_ext[C:, :], approx=True)                      # (1, TQ), EUP slot

    w5_out = jnp.dot(w5_ref[...].astype(bf16), ref_bf,
                     preferred_element_type=f32) + b5_ref[...]              # (C, TQ) f32

    out_ref[...] = (w5_out + mixed_ext[:C, :] * inv).astype(out_ref.dtype)


def _round_up(x: int, m: int) -> int:
    return ((x + m - 1) // m) * m


def _vmem_budget_bytes() -> int:
    """3/4 of physical per-core VMEM if the runtime exposes it; else a
    conservative 48 MiB (fits v7x's 64 MiB parts and raises v5e's 16 MiB
    scoped default)."""
    try:
        cap = int(pltpu.get_tpu_info().vmem_capacity_bytes)
    except Exception:  # older jax / info unavailable
        cap = 64 << 20
    return (cap * 3) // 4


def _pick_query_tile(n: int, n_pad: int, c: int, itemsize: int, budget: int) -> int:
    """Largest lane-aligned query tile dividing the padded token count that
    keeps the working set inside the VMEM budget."""
    def vmem_needed(tq):
        latent_blk = 2 * c * n * itemsize        # (C, N) keys, double-buffered
        io_tiles = 4 * c * tq * itemsize         # refined + output tiles, double-buffered
        l_cache = (c + 1) * n * 2                # bf16 L-cache scratch (+ ones row)
        temps = 10 * n * tq                      # scores(f32) + p(f32) + p(bf16)
        return latent_blk + io_tiles + l_cache + temps + (1 << 20)

    for tq in (512, 384, 256, 128):
        if n_pad % tq == 0 and vmem_needed(tq) <= budget:
            return tq
    # TODO(synk): if even TQ=128 blows the budget (huge C*N, e.g. v7x 64 MiB),
    # tile the key axis with online-softmax accumulators instead of holding the
    # full (C, N) latent block and (N, TQ) scores in VMEM.
    return 128


@jax.jit
def intergate_pallas(latent_nchw, refined_nchw, w4, b4, w5, b5):
    B, C, H, W = latent_nchw.shape
    N = H * W
    n_pad = _round_up(N, 128)
    itemsize = jnp.dtype(latent_nchw.dtype).itemsize
    budget = _vmem_budget_bytes()
    TQ = _pick_query_tile(N, n_pad, C, itemsize, budget)
    num_q = n_pad // TQ

    # Channel-major token layout == natural NCHW flattening: free reshapes,
    # no HBM transposes before or after the kernel.
    lat_cn = latent_nchw.reshape(B, C, N)      # keys keep the true extent (no mask needed)
    ref_cn = refined_nchw.reshape(B, C, N)
    if n_pad != N:
        # Pad ONLY the query/output token axis so output stores stay lane-dense
        # (>= 128 wide, unmasked vst); padded query columns are independent
        # garbage and sliced off below.
        ref_cn = jnp.pad(ref_cn, ((0, 0), (0, 0), (0, n_pad - N)))
    b4_col = b4.reshape(C, 1)
    b5_col = b5.reshape(C, 1)

    out_cn = pl.pallas_call(
        intergate_kernel,
        out_shape=jax.ShapeDtypeStruct((B, C, n_pad), latent_nchw.dtype),
        grid_spec=pltpu.PrefetchScalarGridSpec(
            num_scalar_prefetch=0,
            grid=(B, num_q),
            in_specs=[
                # Full key set; block index constant along q => stays VMEM-resident
                # (re-fetched only at batch boundaries).
                pl.BlockSpec((None, C, N), lambda b, q: (b, 0, 0)),
                # Query tile of refined features (channel-major, lane-dense).
                pl.BlockSpec((None, C, TQ), lambda b, q: (b, 0, q)),
                pl.BlockSpec((C, C), lambda b, q: (0, 0)),   # w4
                pl.BlockSpec((C, 1), lambda b, q: (0, 0)),   # b4 (column)
                pl.BlockSpec((C, C), lambda b, q: (0, 0)),   # w5
                pl.BlockSpec((C, 1), lambda b, q: (0, 0)),   # b5 (column)
            ],
            out_specs=pl.BlockSpec((None, C, TQ), lambda b, q: (b, 0, q)),
            # L-cache (+ ones row) in bf16; persists across grid iterations.
            scratch_shapes=[pltpu.VMEM((C + 1, N), jnp.bfloat16)],
        ),
        compiler_params=pltpu.CompilerParams(
            # q MUST be "arbitrary": the L-cache is written at q == 0 and reused
            # by later query tiles of the same batch.  B stays "parallel" for
            # megacore / 2-TC sharding.
            dimension_semantics=("parallel", "arbitrary"),
            vmem_limit_bytes=budget,
        ),
    )(lat_cn, ref_cn, w4, b4_col, w5, b5_col)

    if n_pad != N:
        out_cn = out_cn[:, :, :N]
    return out_cn.reshape(B, C, H, W)


def intergate_reference(latent_nchw, refined_nchw, w4, b4, w5, b5):
    """Pure-JAX reference mirroring the PyTorch forward exactly (all f32)."""
    B, C, H, W = latent_nchw.shape
    N = H * W
    lat = jnp.einsum('oi,bihw->bohw', w4, latent_nchw) + b4[None, :, None, None]
    lat = lat.reshape(B, C, N)                                   # (B, C, HW)
    ref_flat = refined_nchw.reshape(B, C, N).transpose(0, 2, 1)  # (B, HW, C)
    attn = jax.nn.softmax(jnp.einsum('bnc,bcm->bnm', ref_flat, lat), axis=-1)
    w5_out = jnp.einsum('oi,bihw->bohw', w5, refined_nchw) + b5[None, :, None, None]
    mixed = jnp.einsum('bck,bjk->bcj', lat, attn).reshape(B, C, H, W)
    return w5_out + mixed


if __name__ == "__main__":
    B, C, H, W = 2, 4, 16, 16

    key = jax.random.PRNGKey(0)
    k1, k2, k3, k4, k5, k6 = jax.random.split(key, 6)
    latent = jax.random.normal(k1, (B, C, H, W), dtype=jnp.float32)
    refined = jax.random.normal(k2, (B, C, H, W), dtype=jnp.float32)
    # 1x1 convs => (C_out, C_in) matrices + per-channel biases.
    w4 = jax.random.normal(k3, (C, C), dtype=jnp.float32) * 0.1
    b4 = jax.random.normal(k4, (C,), dtype=jnp.float32) * 0.1
    w5 = jax.random.normal(k5, (C, C), dtype=jnp.float32) * 0.1
    b5 = jax.random.normal(k6, (C,), dtype=jnp.float32) * 0.1

    out = jax.block_until_ready(intergate_pallas(latent, refined, w4, b4, w5, b5))
    ref = jax.block_until_ready(intergate_reference(latent, refined, w4, b4, w5, b5))

    assert out.shape == (B, C, H, W)
    # Tolerance relaxed for bf16 MXU operands (f32 accumulation) + the EUP
    # approximate reciprocal; real bugs give O(0.1..1) errors, well above this.
    assert jnp.allclose(out, ref, atol=3e-2, rtol=3e-2), "mismatch vs reference"
    print("KERNEL_OK")
</pallas_src>

<mosaic_0001>
module attributes {stable_mosaic.version = 11 : i64} {
  func.func @intergate_kernel(%arg0: i32, %arg1: i32, %arg2: memref<1x4x256xf32, #tpu.memory_space<vmem>>, %arg3: memref<1x4x256xf32, #tpu.memory_space<vmem>>, %arg4: memref<4x4xf32, #tpu.memory_space<vmem>>, %arg5: memref<4x1xf32, #tpu.memory_space<vmem>>, %arg6: memref<4x4xf32, #tpu.memory_space<vmem>>, %arg7: memref<4x1xf32, #tpu.memory_space<vmem>>, %arg8: memref<1x4x256xf32, #tpu.memory_space<vmem>>, %arg9: memref<5x256xbf16, #tpu.memory_space<vmem>>) attributes {dimension_semantics = [#tpu.dimension_semantics<parallel>, #tpu.dimension_semantics<arbitrary>], iteration_bounds = array<i64: 2, 1>, scalar_prefetch = 0 : i64, scratch_operands = 1 : i64, tpu.core_type = #tpu.core_type<tc>, window_params = [{transform_indices = @transform_0, window_bounds = array<i64: 1, 4, 256>}, {transform_indices = @transform_1, window_bounds = array<i64: 1, 4, 256>}, {pipeline_mode = #tpu.pipeline_mode<synchronous>, transform_indices = @transform_2, window_bounds = array<i64: 4, 4>}, {pipeline_mode = #tpu.pipeline_mode<synchronous>, transform_indices = @transform_3, window_bounds = array<i64: 4, 1>}, {pipeline_mode = #tpu.pipeline_mode<synchronous>, transform_indices = @transform_4, window_bounds = array<i64: 4, 4>}, {pipeline_mode = #tpu.pipeline_mode<synchronous>, transform_indices = @transform_5, window_bounds = array<i64: 4, 1>}, {transform_indices = @transform_6, window_bounds = array<i64: 1, 4, 256>}]} {
    %c0_i32 = arith.constant 0 : i32
    %0 = arith.cmpi eq, %arg1, %c0_i32 : i32
    %1 = arith.extui %0 : i1 to i32
    %c0_i32_0 = arith.constant 0 : i32
    %2 = arith.cmpi ne, %1, %c0_i32_0 : i32
    scf.if %2 {
      %c0_17 = arith.constant 0 : index
      %c0_18 = arith.constant 0 : index
      %c0_19 = arith.constant 0 : index
      %31 = vector.load %arg2[%c0_17, %c0_18, %c0_19] : memref<1x4x256xf32, #tpu.memory_space<vmem>>, vector<1x4x256xf32>
      %32 = vector.shape_cast %31 : vector<1x4x256xf32> to vector<4x256xf32>
      %c0_20 = arith.constant 0 : index
      %c0_21 = arith.constant 0 : index
      %33 = vector.load %arg4[%c0_20, %c0_21] : memref<4x4xf32, #tpu.memory_space<vmem>>, vector<4x4xf32>
      %cst_22 = arith.constant dense<0.000000e+00> : vector<4x256xf32>
      %34 = tpu.matmul %33, %32, %cst_22 {dimension_numbers = #tpu.dot_dimension_numbers<[1], [0], [0], [1], [0, 0, 1, 1], [], []>} : vector<4x4xf32>, vector<4x256xf32>, vector<4x256xf32> -> vector<4x256xf32>
      %c0_23 = arith.constant 0 : index
      %c0_24 = arith.constant 0 : index
      %35 = vector.load %arg5[%c0_23, %c0_24] : memref<4x1xf32, #tpu.memory_space<vmem>>, vector<4x1xf32>
      %36 = vector.broadcast %35 : vector<4x1xf32> to vector<4x256xf32>
      %37 = arith.addf %34, %36 : vector<4x256xf32>
      %38 = arith.truncf %37 : vector<4x256xf32> to vector<4x256xbf16>
      %c0_25 = arith.constant 0 : index
      %c0_26 = arith.constant 0 : index
      %39 = vector.load %arg9[%c0_25, %c0_26] : memref<5x256xbf16, #tpu.memory_space<vmem>>, vector<4x256xbf16>
      tpu.vector_store %arg9[%c0_25, %c0_26], %38 {strides = array<i32>} : memref<5x256xbf16, #tpu.memory_space<vmem>>, vector<4x256xbf16>,
      %cst_27 = arith.constant 1.000000e+00 : bf16
      %40 = vector.broadcast %cst_27 : bf16 to vector<1x256xbf16>
      %c4 = arith.constant 4 : index
      %c0_28 = arith.constant 0 : index
      %41 = vector.load %arg9[%c4, %c0_28] : memref<5x256xbf16, #tpu.memory_space<vmem>>, vector<1x256xbf16>
      tpu.vector_store %arg9[%c4, %c0_28], %40 {strides = array<i32>} : memref<5x256xbf16, #tpu.memory_space<vmem>>, vector<1x256xbf16>,
    } else {
    }
    %c0 = arith.constant 0 : index
    %c0_1 = arith.constant 0 : index
    %c0_2 = arith.constant 0 : index
    %3 = vector.load %arg3[%c0, %c0_1, %c0_2] : memref<1x4x256xf32, #tpu.memory_space<vmem>>, vector<1x4x256xf32>
    %4 = vector.shape_cast %3 : vector<1x4x256xf32> to vector<4x256xf32>
    %5 = arith.truncf %4 : vector<4x256xf32> to vector<4x256xbf16>
    %c0_3 = arith.constant 0 : index
    %c0_4 = arith.constant 0 : index
    %6 = vector.load %arg9[%c0_3, %c0_4] : memref<5x256xbf16, #tpu.memory_space<vmem>>, vector<4x256xbf16>
    %cst = arith.constant dense<0.000000e+00> : vector<256x256xf32>
    %7 = tpu.matmul %6, %5, %cst {dimension_numbers = #tpu.dot_dimension_numbers<[0], [0], [1], [1], [0, 1, 1, 1], [], []>} : vector<4x256xbf16>, vector<4x256xbf16>, vector<256x256xf32> -> vector<256x256xf32>
    %cst_5 = arith.constant dense<0xFF800000> : vector<256xf32>
    %8 = vector.multi_reduction <maximumf>, %7, %cst_5 [0] : vector<256x256xf32> to vector<256xf32>
    %9 = vector.shape_cast %8 : vector<256xf32> to vector<1x256xf32>
    %10 = vector.broadcast %9 : vector<1x256xf32> to vector<256x256xf32>
    %11 = arith.subf %7, %10 : vector<256x256xf32>
    %12 = math.exp %11 : vector<256x256xf32>
    %13 = arith.truncf %12 : vector<256x256xf32> to vector<256x256xbf16>
    %c0_6 = arith.constant 0 : index
    %c0_7 = arith.constant 0 : index
    %14 = vector.load %arg9[%c0_6, %c0_7] : memref<5x256xbf16, #tpu.memory_space<vmem>>, vector<5x256xbf16>
    %cst_8 = arith.constant dense<0.000000e+00> : vector<5x256xf32>
    %15 = tpu.matmul %14, %13, %cst_8 {dimension_numbers = #tpu.dot_dimension_numbers<[1], [0], [0], [1], [0, 0, 1, 1], [], []>} : vector<5x256xbf16>, vector<256x256xbf16>, vector<5x256xf32> -> vector<5x256xf32>
    %16 = vector.extract_strided_slice %15 {offsets = [4, 0], sizes = [1, 256], strides = [1, 1]} : vector<5x256xf32> to vector<1x256xf32>
    %17 = tpu.reciprocal %16 {approx = true} : vector<1x256xf32> -> vector<1x256xf32>
    %c0_9 = arith.constant 0 : index
    %c0_10 = arith.constant 0 : index
    %18 = vector.load %arg6[%c0_9, %c0_10] : memref<4x4xf32, #tpu.memory_space<vmem>>, vector<4x4xf32>
    %19 = arith.truncf %18 : vector<4x4xf32> to vector<4x4xbf16>
    %cst_11 = arith.constant dense<0.000000e+00> : vector<4x256xf32>
    %20 = tpu.matmul %19, %5, %cst_11 {dimension_numbers = #tpu.dot_dimension_numbers<[1], [0], [0], [1], [0, 0, 1, 1], [], []>} : vector<4x4xbf16>, vector<4x256xbf16>, vector<4x256xf32> -> vector<4x256xf32>
    %c0_12 = arith.constant 0 : index
    %c0_13 = arith.constant 0 : index
    %21 = vector.load %arg7[%c0_12, %c0_13] : memref<4x1xf32, #tpu.memory_space<vmem>>, vector<4x1xf32>
    %22 = vector.broadcast %21 : vector<4x1xf32> to vector<4x256xf32>
    %23 = arith.addf %20, %22 : vector<4x256xf32>
    %24 = vector.extract_strided_slice %15 {offsets = [0, 0], sizes = [4, 256], strides = [1, 1]} : vector<5x256xf32> to vector<4x256xf32>
    %25 = vector.broadcast %17 : vector<1x256xf32> to vector<4x256xf32>
    %26 = arith.mulf %24, %25 : vector<4x256xf32>
    %27 = arith.addf %23, %26 : vector<4x256xf32>
    %c0_14 = arith.constant 0 : index
    %c0_15 = arith.constant 0 : index
    %c0_16 = arith.constant 0 : index
    %28 = vector.load %arg8[%c0_14, %c0_15, %c0_16] : memref<1x4x256xf32, #tpu.memory_space<vmem>>, vector<1x4x256xf32>
    %29 = vector.shape_cast %28 : vector<1x4x256xf32> to vector<4x256xf32>
    %30 = vector.shape_cast %27 : vector<4x256xf32> to vector<1x4x256xf32>
    tpu.vector_store %arg8[%c0_14, %c0_15, %c0_16], %30 {strides = array<i32>} : memref<1x4x256xf32, #tpu.memory_space<vmem>>, vector<1x4x256xf32>,
    return
  }
  func.func @transform_0(%arg0: i32, %arg1: i32) -> (i32, i32, i32) {
    %c0_i32 = arith.constant 0 : i32
    %c0_i32_0 = arith.constant 0 : i32
    %c0_i32_1 = arith.constant 0 : i32
    return %arg0, %c0_i32, %c0_i32_0 : i32, i32, i32
  }
  func.func @transform_1(%arg0: i32, %arg1: i32) -> (i32, i32, i32) {
    %c0_i32 = arith.constant 0 : i32
    %c0_i32_0 = arith.constant 0 : i32
    return %arg0, %c0_i32, %arg1 : i32, i32, i32
  }
  func.func @transform_2(%arg0: i32, %arg1: i32) -> (i32, i32) {
    %c0_i32 = arith.constant 0 : i32
    %c0_i32_0 = arith.constant 0 : i32
    %c0_i32_1 = arith.constant 0 : i32
    return %c0_i32, %c0_i32_0 : i32, i32
  }
  func.func @transform_3(%arg0: i32, %arg1: i32) -> (i32, i32) {
    %c0_i32 = arith.constant 0 : i32
    %c0_i32_0 = arith.constant 0 : i32
    %c0_i32_1 = arith.constant 0 : i32
    return %c0_i32, %c0_i32_0 : i32, i32
  }
  func.func @transform_4(%arg0: i32, %arg1: i32) -> (i32, i32) {
    %c0_i32 = arith.constant 0 : i32
    %c0_i32_0 = arith.constant 0 : i32
    %c0_i32_1 = arith.constant 0 : i32
    return %c0_i32, %c0_i32_0 : i32, i32
  }
  func.func @transform_5(%arg0: i32, %arg1: i32) -> (i32, i32) {
    %c0_i32 = arith.constant 0 : i32
    %c0_i32_0 = arith.constant 0 : i32
    %c0_i32_1 = arith.constant 0 : i32
    return %c0_i32, %c0_i32_0 : i32, i32
  }
  func.func @transform_6(%arg0: i32, %arg1: i32) -> (i32, i32, i32) {
    %c0_i32 = arith.constant 0 : i32
    %c0_i32_0 = arith.constant 0 : i32
    return %arg0, %c0_i32, %arg1 : i32, i32, i32
  }
}

</mosaic_0001>

<bundles_post_ra>
// kernel: intergate_pallas.1
= control target key start
LH: loop header
LB: loop body
LE: loop exit
PB: predicated region body
PF: predicated region fallthrough
CT: control target
= control target key end

     0   :  { %s1449_s21 = smov 0   ;;  %s1451_s22 = smov 0   ;;  %s1916_s0 = inlined_call_operand.vmem [shape: f32[2,4,256], index: 0, kind: input, shape index: {}]   ;;  %s1917_s1 = inlined_call_operand.vmem [shape: f32[2,4,256], index: 1, kind: input, shape index: {}]   ;;  %s1918_s2 = inlined_call_operand.vmem [shape: f32[4,4], index: 2, kind: input, shape index: {}]   ;;  %s1919_s3 = inlined_call_operand.vmem [shape: f32[4,1], index: 3, kind: input, shape index: {}]   ;;  %s1920_s4 = inlined_call_operand.vmem [shape: f32[4,4], index: 4, kind: input, shape index: {}]   ;;  %s1921_s5 = inlined_call_operand.vmem [shape: f32[4,1], index: 5, kind: input, shape index: {}]   ;;  %s1922_s6 = inlined_call_operand.vmem [shape: f32[2,4,256], index: 6, kind: output, shape index: {}]  }
   0x1   :  { %s1453_s23 = smov 0  }
   0x2 LB: > { %s28_s24 = sadd.s32 1, %s1407_s22  ;;  %p1178_p0 = scmp.ge.s32.totalorder %s1411_s23, 1  ;;  %s1411_s23 = sphi %s1453_s23, %s16_s23   ;;  %s1407_s22 = sphi %s1451_s22, %s1975_s22   ;;  %s1403_s21 = sphi %s1449_s21, %s1974_s21  }
   0x3   : > { %p30_p1 = scmp.ge.s32.totalorder %s28_s24, 2  ;;  %p243_p2 = scmp.lt.s32.totalorder %s1411_s23, 3 }
   0x5   : > { %s1977_s24 = smov (%p30_p1, %s28_s24), 0  ;;  %p244_p3 = pnand %p1178_p0, %p243_p2 }
   0x7   : > { %247 = sbr.rel (%p244_p3) target bundleno = 990 (0x3de), region = 44 }
   0xc   : > { %p286_p4 = scmp.lt.s32.totalorder %s1403_s21, 1  ;;  %v1413_v0 = vmov 0   ;;  %v319_v1 = vld [vmem:[%s1919_s3] sm:$0xf]  ;;  %vm333_vm0 = vcmask 1043456   ;;  %vm329_vm1 = vcmask 31744  }
   0xd   : > { %1255 = vset.pattern.permute.xlu0 %v1413_v0  ;;  %1256 = vset.pattern.permute.xlu1 %v1413_v0  ;;  %v318_v4 = vld [vmem:[%s1918_s2] sm:$0xf]  ;;  %vm480_vm2 = vcmask 1041408   ;;  %vm380_vm3 = vcmask 1042434   ;;  %vm381_vm4 = vsmask.f32 2304 }
   0xe   : > { %s1979_s21 = smov (!%p286_p4, %s1403_s21), 1  ;;  %322 = vperm.xlu0 %1255, %v319_v1   ;;  %vm383_vm5 = vcmask 1046534   ;;  %vm384_vm6 = vsmask.f32 6400  ;;  %vm382_vm7 = vmand %vm380_vm3, %vm381_vm4  ;;  %v387_v24 = vld [vmem:[#allocation2] sm:$0x44] }
   0xf   : > { %s1470_s27 = sshll.u32 %s1979_s21, 3  ;;  %vm385_vm8 = vmand %vm383_vm5, %vm384_vm6 }
  0x10   : > { %s290_s30 = scalar_lea.vmem %s1916_s0, %s1470_s27  ;;  %s299_s9 = scalar_lea.vmem %s1917_s1, %s1470_s27  ;;  %vm386_vm9 = vmor %vm385_vm8, %vm382_vm7 }
  0x11   : > { %v317_v2 = vld [vmem:[%s290_s30] sm:$0xff]  ;;  %v388_v25 = vsel %vm386_vm9, 1065369472, %v387_v24  ;;  %s309_s18 = scalar_lea.vmem %s1922_s6, %s1470_s27 }
  0x12   : > { %326 = vst [vmem:[#allocation1] ss:$2 sm:$0xff] %v317_v2  ;;  %v390_v3 = vld [vmem:[%s299_s9] sm:$0xff] }
  0x13   : > { %389 = vst [vmem:[#allocation2] sm:$0x44] %v388_v25 }
  0x19   : > { %v327_v5 = vld.sshfl [vmem:[#allocation1] sm:$0xff pattern:$0x75316420]  ;;  %v328_v6 = vld.sshfl [vmem:[#allocation1 + $0x8] sm:$0xff pattern:$0x75316420] }
  0x1a   : > { %1185 = vmatpush.msk.msra.mxu0 %vm333_vm0, %v327_v5  ;;  %1187 = vmatpush.msk.msra.mxu1 %vm333_vm0, %v328_v6  ;;  %392 = vst [vmem:[#allocation1] ss:$2 sm:$0xff] %v390_v3 }
  0x1b   : > { %1186 = vmatmul.msk.f32.vlgmr.msra.gmra.mxu0 %vm329_vm1, %v318_v4  ;;  %1188 = vmatmul.msk.f32.vlgmr.msra.gmra.mxu1 %vm329_vm1, %v318_v4 }
  0x21   : > { %v393_v7 = vld.sshfl [vmem:[#allocation1] sm:$0xff pattern:$0x75316420]  ;;  %v394_v9 = vld.sshfl [vmem:[#allocation1 + $0x8] sm:$0xff pattern:$0x75316420] }
  0x22   : > { %v397_v8 = vpack.c.bf16 %v393_v7, %v393_v7  ;;  %v398_v10 = vpack.c.bf16 %v394_v9, %v394_v9 }
  0x24   : > { %v1487_v11 = vsel %vm480_vm2, %v397_v8, 0  ;;  %v1490_v12 = vsel %vm480_vm2, %v398_v10, 0 }
  0x25   : > { %1940 = vst [vmem:[#allocation3_spill] sm:$0xff] %v1487_v11  ;;  %494 = vmatpush.bf16.msrb.mxu0 %v1487_v11  ;;  %1228 = vmatpush.bf16.msra.mxu2 %v1487_v11 }
  0x26   : > { %1941 = vst [vmem:[#allocation4_spill] sm:$0xff] %v1490_v12  ;;  %583 = vmatpush.bf16.msrb.mxu1 %v1490_v12  ;;  %1229 = vmatpush.bf16.msra.mxu3 %v1490_v12 }
  0x80   : > { %v323_v13 = vpop.permute.xlu0 %322 }
  0x98   : > { %v355_v14 = vpop.f32.mrf.mxu0  ;;  %v375_v15 = vpop.f32.mrf.mxu1 }
  0x99   : > { %v356_v16 = vadd.f32 %v355_v14, %v323_v13  ;;  %v376_v17 = vadd.f32 %v375_v15, %v323_v13 }
  0x9b   : > { %v378_v18 = vpack.c.bf16 %v376_v17, %v356_v16 }
  0x9d   : > { %379 = vst [vmem:[#allocation2] sm:$0x33] %v378_v18 }
  0xa4   : > { %v399_v19 = vld [vmem:[#allocation2] sm:$0x33] }
  0xa5   : > { %v401_v20 = vunpack.c.l.b16 %v399_v19  ;;  %v402_v21 = vunpack.c.h.b16 %v399_v19 }
  0xa7   : > { %v403_v22 = vpack.c.b16 %v401_v20, %v401_v20  ;;  %v404_v23 = vpack.c.b16 %v402_v21, %v402_v21 }
  0xa9   : > { %407 = vxpose.binary.xlu0.c.b16.start.end [1/2] (short) %v404_v23, %v403_v22, 128 }
 0x155   : > { %v415_v26 = vpop.trf.xlu0 }
 0x156   : > { %1189 = vmatmul.msk.bf16.vlgmr.msrb.gmra.mxu0 %vm329_vm1, %v415_v26  ;;  %1205 = vmatmul.msk.bf16.vlgmr.msrb.gmra.mxu1 %vm329_vm1, %v415_v26 }
 0x15d   : > { %v416_v27 = vpop.trf.xlu0 }
 0x165   : > { %v417_v28 = vpop.trf.xlu0 }
 0x166   : > { %1190 = vmatmul.msk.bf16.gmra.mxu0 %vm329_vm1, %v417_v28  ;;  %1206 = vmatmul.msk.bf16.gmra.mxu1 %vm329_vm1, %v417_v28 }
 0x16d   : > { %v418_v29 = vpop.trf.xlu0 }
 0x175   : > { %v419_v30 = vpop.trf.xlu0 }
 0x176   : > { %1191 = vmatmul.msk.bf16.gmra.mxu0 %vm329_vm1, %v419_v30  ;;  %1207 = vmatmul.msk.bf16.gmra.mxu1 %vm329_vm1, %v419_v30 }
 0x17d   : > { %v420_v31 = vpop.trf.xlu0 }
 0x185   : > { %v421_v32 = vpop.trf.xlu0 }
 0x186   : > { %1192 = vmatmul.msk.bf16.gmra.mxu0 %vm329_vm1, %v421_v32  ;;  %1208 = vmatmul.msk.bf16.gmra.mxu1 %vm329_vm1, %v421_v32 }
 0x18d   : > { %v422_v33 = vpop.trf.xlu0 }
 0x195   : > { %v423_v34 = vpop.trf.xlu0 }
 0x196   : > { %1193 = vmatmul.msk.bf16.gmra.mxu0 %vm329_vm1, %v423_v34  ;;  %1209 = vmatmul.msk.bf16.gmra.mxu1 %vm329_vm1, %v423_v34 }
 0x19d   : > { %v424_v35 = vpop.trf.xlu0 }
 0x1a5   : > { %v425_v36 = vpop.trf.xlu0 }
 0x1a6   : > { %1194 = vmatmul.msk.bf16.vlgmr.msra.gmra.mxu2 %vm329_vm1, %v425_v36  ;;  %1210 = vmatmul.msk.bf16.vlgmr.msra.gmra.mxu3 %vm329_vm1, %v425_v36 }
 0x1ad   : > { %v426_v37 = vpop.trf.xlu0 }
 0x1b5   : > { %v427_v38 = vpop.trf.xlu0 }
 0x1b6   : > { %1195 = vmatmul.msk.bf16.gmra.mxu2 %vm329_vm1, %v427_v38  ;;  %1211 = vmatmul.msk.bf16.gmra.mxu3 %vm329_vm1, %v427_v38 }
 0x1bd   : > { %v428_v39 = vpop.trf.xlu0 }
 0x1c5   : > { %v429_v40 = vpop.trf.xlu0 }
 0x1c6   : > { %1196 = vmatmul.msk.bf16.gmra.mxu2 %vm329_vm1, %v429_v40  ;;  %1212 = vmatmul.msk.bf16.gmra.mxu3 %vm329_vm1, %v429_v40 }
 0x1cd   : > { %v430_v48 = vpop.trf.xlu0 }
 0x1d3   : > { %v1563_v60 = vpop.f32.mrf.mxu0  ;;  %v1579_v4 = vpop.f32.mrf.mxu1 }
 0x1d4   : > { %1950 = vst [vmem:[#allocation13_spill] sm:$0xff] %v1579_v4 }
 0x1d6   : > { %1197 = vmatmul.msk.bf16.gmra.mxu2 %vm329_vm1, %v416_v27  ;;  %1213 = vmatmul.msk.bf16.gmra.mxu3 %vm329_vm1, %v416_v27 }
 0x1db   : > { %v1569_v63 = vpop.f32.mrf.mxu0  ;;  %v1587_v8 = vpop.f32.mrf.mxu1 }
 0x1dc   : > { %1947 = vst [vmem:[#allocation10_spill] sm:$0xff] %v1569_v63 }
 0x1dd   : > { %1952 = vst [vmem:[#allocation15_spill] sm:$0xff] %v1587_v8 }
 0x1e3   : > { %v1575_v2 = vpop.f32.mrf.mxu0  ;;  %v1595_v14 = vpop.f32.mrf.mxu1 }
 0x1e4   : > { %1949 = vst [vmem:[#allocation12_spill] sm:$0xff] %v1575_v2 }
 0x1e5   : > { %1954 = vst [vmem:[#allocation17_spill] sm:$0xff] %v1595_v14 }
 0x1e6   : > { %1198 = vmatmul.msk.bf16.gmra.mxu2 %vm329_vm1, %v418_v29  ;;  %1214 = vmatmul.msk.bf16.gmra.mxu3 %vm329_vm1, %v418_v29 }
 0x1eb   : > { %v1583_v6 = vpop.f32.mrf.mxu0  ;;  %v1603_v18 = vpop.f32.mrf.mxu1 }
 0x1ec   : > { %1951 = vst [vmem:[#allocation14_spill] sm:$0xff] %v1583_v6  ;;  %v666_v32 = vmax.f32 %v1569_v63, %v1583_v6 }
 0x1ed   : > { %1956 = vst [vmem:[#allocation19_spill] sm:$0xff] %v1603_v18 }
 0x1f3   : > { %v1591_v10 = vpop.f32.mrf.mxu0  ;;  %v1611_v22 = vpop.f32.mrf.mxu1 }
 0x1f4   : > { %1953 = vst [vmem:[#allocation16_spill] sm:$0xff] %v1591_v10 }
 0x1f6   : > { %1199 = vmatmul.msk.bf16.gmra.mxu2 %vm329_vm1, %v420_v31  ;;  %1215 = vmatmul.msk.bf16.gmra.mxu3 %vm329_vm1, %v420_v31 }
 0x1fb   : > { %v1599_v16 = vpop.f32.mrf.mxu0  ;;  %v1619_v26 = vpop.f32.mrf.mxu1 }
 0x1fc   : > { %1955 = vst [vmem:[#allocation18_spill] sm:$0xff] %v1599_v16  ;;  %v668_v34 = vmax.f32 %v666_v32, %v1599_v16 }
 0x203   : > { %v1607_v20 = vpop.f32.mrf.mxu0  ;;  %v1627_v30 = vpop.f32.mrf.mxu1 }
 0x206   : > { %1200 = vmatmul.msk.bf16.gmra.mxu2 %vm329_vm1, %v422_v33  ;;  %1216 = vmatmul.msk.bf16.gmra.mxu3 %vm329_vm1, %v422_v33  ;;  %v665_v33 = vmax.f32 %v1563_v60, %v1575_v2 }
 0x208   : > { %v667_v36 = vmax.f32 %v665_v33, %v1591_v10 }
 0x20b   : > { %v1615_v24 = vpop.f32.mrf.mxu0  ;;  %v1643_v40 = vpop.f32.mrf.mxu1 }
 0x213   : > { %v1623_v28 = vpop.f32.mrf.mxu0 }
 0x216   : > { %1201 = vmatmul.msk.bf16.gmra.mxu2 %vm329_vm1, %v424_v35  ;;  %1217 = vmatmul.msk.bf16.gmra.mxu3 %vm329_vm1, %v424_v35 }
 0x21b   : > { %v1636_v35 = vpop.f32.mrf.mxu0 }
 0x226   : > { %1202 = vmatmul.msk.bf16.gmra.mxu2 %vm329_vm1, %v426_v37  ;;  %1218 = vmatmul.msk.bf16.gmra.mxu3 %vm329_vm1, %v426_v37  ;;  %v670_v37 = vmax.f32 %v668_v34, %v1615_v24 }
 0x229   : > { %v1523_v41 = vpop.f32.mrf.mxu2  ;;  %v1525_v42 = vpop.f32.mrf.mxu3 }
 0x231   : > { %v1527_v43 = vpop.f32.mrf.mxu2  ;;  %v1529_v44 = vpop.f32.mrf.mxu3 }
 0x236   : > { %1203 = vmatmul.msk.bf16.gmra.mxu2 %vm329_vm1, %v428_v39  ;;  %1219 = vmatmul.msk.bf16.gmra.mxu3 %vm329_vm1, %v428_v39  ;;  %v669_v39 = vmax.f32 %v667_v36, %v1607_v20 }
 0x238   : > { %v671_v12 = vmax.f32 %v669_v39, %v1623_v28 }
 0x239   : > { %v1533_v45 = vpop.f32.mrf.mxu2  ;;  %v1535_v46 = vpop.f32.mrf.mxu3 }
 0x23a   : > { %v673_v32 = vmax.f32 %v671_v12, %v1523_v41 }
 0x23c   : > { %v675_v34 = vmax.f32 %v673_v32, %v1533_v45 }
 0x241   : > { %v1537_v47 = vpop.f32.mrf.mxu2  ;;  %v1541_v49 = vpop.f32.mrf.mxu3 }
 0x246   : > { %1204 = vmatmul.msk.bf16.gmra.mxu2 %vm329_vm1, %v430_v48  ;;  %1220 = vmatmul.msk.bf16.gmra.mxu3 %vm329_vm1, %v430_v48  ;;  %v672_v48 = vmax.f32 %v670_v37, %v1636_v35  ;;  %v1658_v37 = vpop.f32.mrf.mxu1 }
 0x248   : > { %v674_v11 = vmax.f32 %v672_v48, %v1527_v43 }
 0x249   : > { %v1543_v50 = vpop.f32.mrf.mxu2  ;;  %v1547_v52 = vpop.f32.mrf.mxu3 }
 0x24a   : > { %v676_v33 = vmax.f32 %v674_v11, %v1537_v47  ;;  %v677_v36 = vmax.f32 %v675_v34, %v1543_v50 }
 0x251   : > { %v1545_v51 = vpop.f32.mrf.mxu2  ;;  %v1551_v54 = vpop.f32.mrf.mxu3 }
 0x252   : > { %v678_v2 = vmax.f32 %v676_v33, %v1545_v51 }
 0x259   : > { %v1549_v53 = vpop.f32.mrf.mxu2  ;;  %v1555_v56 = vpop.f32.mrf.mxu3 }
 0x25a   : > { %1942 = vst [vmem:[#allocation5_spill] sm:$0xff] %v1549_v53  ;;  %v679_v39 = vmax.f32 %v677_v36, %v1549_v53 }
 0x261   : > { %v1553_v55 = vpop.f32.mrf.mxu2  ;;  %v1559_v58 = vpop.f32.mrf.mxu3 }
 0x262   : > { %1943 = vst [vmem:[#allocation6_spill] sm:$0xff] %v1553_v55  ;;  %v680_v16 = vmax.f32 %v678_v2, %v1553_v55  ;;  %v703_v55 = vmax.f32 %v1587_v8, %v1603_v18 }
 0x263   : > { %1945 = vst [vmem:[#allocation8_spill] sm:$0xff] %v1559_v58 }
 0x269   : > { %v1557_v57 = vpop.f32.mrf.mxu2  ;;  %v1567_v62 = vpop.f32.mrf.mxu3 }
 0x26a   : > { %1944 = vst [vmem:[#allocation7_spill] sm:$0xff] %v1557_v57  ;;  %v681_v12 = vmax.f32 %v679_v39, %v1557_v57  ;;  %v702_v39 = vmax.f32 %v1579_v4, %v1595_v14 }
 0x271   : > { %v1561_v59 = vpop.f32.mrf.mxu2  ;;  %v1573_v1 = vpop.f32.mrf.mxu3 }
 0x272   : > { %1946 = vst [vmem:[#allocation9_spill] sm:$0xff] %v1561_v59  ;;  %v682_v48 = vmax.f32 %v680_v16, %v1561_v59 }
 0x279   : > { %v1565_v61 = vpop.f32.mrf.mxu2  ;;  %v1581_v5 = vpop.f32.mrf.mxu3 }
 0x27a   : > { %v683_v32 = vmax.f32 %v681_v12, %v1565_v61  ;;  %v1679_v12 = vpop.f32.mrf.mxu1 }
 0x281   : > { %v1571_v0 = vpop.f32.mrf.mxu2  ;;  %v1589_v9 = vpop.f32.mrf.mxu3 }
 0x282   : > { %1948 = vst [vmem:[#allocation11_spill] sm:$0xff] %v1571_v0  ;;  %v684_v11 = vmax.f32 %v682_v48, %v1571_v0  ;;  %v705_v48 = vmax.f32 %v703_v55, %v1619_v26 }
 0x284   : > { %v707_v8 = vmax.f32 %v705_v48, %v1643_v40 }
 0x286   : > { %v709_v59 = vmax.f32 %v707_v8, %v1679_v12 }
 0x289   : > { %v1577_v3 = vpop.f32.mrf.mxu2  ;;  %v1597_v15 = vpop.f32.mrf.mxu3 }
 0x28a   : > { %v685_v2 = vmax.f32 %v683_v32, %v1577_v3 }
 0x291   : > { %v1585_v7 = vpop.f32.mrf.mxu2  ;;  %v1605_v19 = vpop.f32.mrf.mxu3 }
 0x292   : > { %v686_v33 = vmax.f32 %v684_v11, %v1585_v7 }
 0x299   : > { %v1593_v13 = vpop.f32.mrf.mxu2  ;;  %v1613_v23 = vpop.f32.mrf.mxu3 }
 0x29a   : > { %v687_v36 = vmax.f32 %v685_v2, %v1593_v13 }
 0x2a1   : > { %v1601_v17 = vpop.f32.mrf.mxu2  ;;  %v1621_v27 = vpop.f32.mrf.mxu3 }
 0x2a2   : > { %v688_v34 = vmax.f32 %v686_v33, %v1601_v17  ;;  %v704_v33 = vmax.f32 %v702_v39, %v1611_v22 }
 0x2a4   : > { %v706_v55 = vmax.f32 %v704_v33, %v1627_v30 }
 0x2a9   : > { %v1609_v21 = vpop.f32.mrf.mxu2  ;;  %v1629_v31 = vpop.f32.mrf.mxu3 }
 0x2aa   : > { %v689_v11 = vmax.f32 %v687_v36, %v1609_v21  ;;  %v708_v36 = vmax.f32 %v706_v55, %v1658_v37 }
 0x2ac   : > { %v710_v39 = vmax.f32 %v708_v36, %v1525_v42 }
 0x2b1   : > { %v1617_v25 = vpop.f32.mrf.mxu2  ;;  %v1648_v6 = vpop.f32.mrf.mxu3 }
 0x2b2   : > { %v690_v16 = vmax.f32 %v688_v34, %v1617_v25 }
 0x2b9   : > { %v1625_v29 = vpop.f32.mrf.mxu2  ;;  %v1664_v63 = vpop.f32.mrf.mxu3 }
 0x2ba   : > { %v691_v2 = vmax.f32 %v689_v11, %v1625_v29  ;;  %v712_v11 = vmax.f32 %v710_v39, %v1535_v46 }
 0x2bc   : > { %v714_v33 = vmax.f32 %v712_v11, %v1547_v52 }
 0x2c1   : > { %v1640_v38 = vpop.f32.mrf.mxu2  ;;  %v1686_v34 = vpop.f32.mrf.mxu3 }
 0x2c2   : > { %v692_v32 = vmax.f32 %v690_v16, %v1640_v38  ;;  %v711_v16 = vmax.f32 %v709_v59, %v1529_v44 }
 0x2c4   : > { %v713_v48 = vmax.f32 %v711_v16, %v1541_v49 }
 0x2c6   : > { %v715_v14 = vmax.f32 %v713_v48, %v1551_v54 }
 0x2c8   : > { %v717_v8 = vmax.f32 %v715_v14, %v1559_v58 }
 0x2c9   : > { %v1656_v10 = vpop.f32.mrf.mxu2  ;;  %v1700_v0 = vpop.f32.mrf.mxu3 }
 0x2ca   : > { %v693_v57 = vmax.f32 %v691_v2, %v1656_v10  ;;  %v716_v2 = vmax.f32 %v714_v33, %v1555_v56  ;;  %v719_v59 = vmax.f32 %v717_v8, %v1573_v1 }
 0x2cc   : > { %v721_v55 = vmax.f32 %v719_v59, %v1589_v9 }
 0x2ce   : > { %v723_v16 = vmax.f32 %v721_v55, %v1605_v19 }
 0x2d0   : > { %v725_v14 = vmax.f32 %v723_v16, %v1621_v27 }
 0x2d1   : > { %v1677_v53 = vpop.f32.mrf.mxu2  ;;  %v1712_v8 = vpop.f32.mrf.mxu3 }
 0x2d2   : > { %v694_v4 = vmax.f32 %v692_v32, %v1677_v53  ;;  %v727_v33 = vmax.f32 %v725_v14, %v1648_v6 }
 0x2d4   : > { %v695_v18 = vmax.f32 %v693_v57, %v694_v4  ;;  %v718_v4 = vmax.f32 %v716_v2, %v1567_v62 }
 0x2d6   : > { %v696_v32 = vrot.slane %v695_v18, 4  ;;  %v720_v36 = vmax.f32 %v718_v4, %v1581_v5 }
 0x2d8   : > { %v697_v57 = vmax.f32 %v695_v18, %v696_v32  ;;  %v722_v48 = vmax.f32 %v720_v36, %v1597_v15  ;;  %v729_v32 = vmax.f32 %v727_v33, %v1686_v34 }
 0x2da   : > { %v698_v39 = vrot.slane %v697_v57, 2  ;;  %v724_v11 = vmax.f32 %v722_v48, %v1613_v23  ;;  %v731_v59 = vmax.f32 %v729_v32, %v1712_v8 }
 0x2dc   : > { %v699_v58 = vmax.f32 %v697_v57, %v698_v39  ;;  %v726_v18 = vmax.f32 %v724_v11, %v1629_v31 }
 0x2de   : > { %v728_v2 = vmax.f32 %v726_v18, %v1664_v63  ;;  %v700_v4 = vrot.slane %v699_v58, 1 }
 0x2e0   : > { %v730_v55 = vmax.f32 %v728_v2, %v1700_v0  ;;  %v1719_v16 = vmax.f32 %v699_v58, %v700_v4 }
 0x2e2   : > { %v732_v36 = vmax.f32 %v730_v55, %v731_v59  ;;  %v767_v57 = vsub.f32 %v1543_v50, %v1719_v16  ;;  %v769_v39 = vsub.f32 %v1545_v51, %v1719_v16  ;;  %v763_v14 = vsub.f32 %v1533_v45, %v1719_v16 }
 0x2e3   : > { %v765_v33 = vsub.f32 %v1537_v47, %v1719_v16  ;;  %v759_v58 = vsub.f32 %v1523_v41, %v1719_v16  ;;  %v761_v50 = vsub.f32 %v1527_v43, %v1719_v16  ;;  %v755_v45 = vsub.f32 %v1623_v28, %v1719_v16 }
 0x2e4   : > { %v733_v48 = vrot.slane %v732_v36, 4  ;;  %v859_v18 = vmul.f32 1.442695, %v767_v57  ;;  %v863_v32 = vmul.f32 1.442695, %v769_v39  ;;  %v757_v47 = vsub.f32 %v1636_v35, %v1719_v16 }
 0x2e5   : > { %v851_v59 = vmul.f32 1.442695, %v763_v14  ;;  %v855_v4 = vmul.f32 1.442695, %v765_v33  ;;  %v843_v55 = vmul.f32 1.442695, %v759_v58  ;;  %v751_v43 = vsub.f32 %v1607_v20, %v1719_v16 }
 0x2e6   : > { %v734_v11 = vmax.f32 %v732_v36, %v733_v48  ;;  %1257 = vpow2.f32 %v859_v18  ;;  %v847_v36 = vmul.f32 1.442695, %v761_v50  ;;  %v801_v48 = vsub.f32 %v1677_v53, %v1719_v16  ;;  %v1957_v53 = vld [vmem:[#allocation10_spill] sm:$0xff]  ;;  %v1958_v20 = vld [vmem:[#allocation16_spill] sm:$0xff] }
 0x2e7   : > { %1259 = vpow2.f32 %v863_v32  ;;  %v835_v39 = vmul.f32 1.442695, %v755_v45  ;;  %v753_v28 = vsub.f32 %v1615_v24, %v1719_v16  ;;  %v739_v35 = vsub.f32 %v1563_v60, %v1719_v16  ;;  %v1959_v24 = vld [vmem:[#allocation18_spill] sm:$0xff] }
 0x2e8   : > { %v735_v2 = vrot.slane %v734_v11, 2  ;;  %1261 = vpow2.f32 %v851_v59  ;;  %v927_v58 = vmul.f32 1.442695, %v801_v48  ;;  %v747_v59 = vsub.f32 %v1958_v20, %v1719_v16 }
 0x2e9   : > { %1263 = vpow2.f32 %v855_v4  ;;  %v827_v4 = vmul.f32 1.442695, %v751_v43  ;;  %v749_v45 = vsub.f32 %v1959_v24, %v1719_v16 }
 0x2ea   : > { %v736_v51 = vmax.f32 %v734_v11, %v735_v2  ;;  %1265 = vpow2.f32 %v843_v55  ;;  %v839_v11 = vmul.f32 1.442695, %v757_v47  ;;  %v741_v2 = vsub.f32 %v1957_v53, %v1719_v16  ;;  %v1960_v47 = vld [vmem:[#allocation12_spill] sm:$0xff]  ;;  %v1961_v53 = vld [vmem:[#allocation14_spill] sm:$0xff] }
 0x2eb   : > { %1267 = vpow2.f32 %v847_v36  ;;  %v831_v55 = vmul.f32 1.442695, %v753_v28  ;;  %v743_v36 = vsub.f32 %v1960_v47, %v1719_v16  ;;  %v791_v28 = vsub.f32 %v1609_v21, %v1719_v16 }
 0x2ec   : > { %v1258_v41 = vpop.eup %1257  ;;  %v737_v57 = vrot.slane %v736_v51, 1  ;;  %1269 = vpow2.f32 %v835_v39  ;;  %v819_v39 = vmul.f32 1.442695, %v747_v59 }
 0x2ed   : > { %v1260_v14 = vpop.eup %1259  ;;  %1271 = vpow2.f32 %v839_v11  ;;  %v823_v11 = vmul.f32 1.442695, %v749_v45 }
 0x2ee   : > { %v1262_v33 = vpop.eup %1261  ;;  %v945_v18 = vpack.c.bf16 %v1260_v14, %v1258_v41  ;;  %v1749_v50 = vmax.f32 %v736_v51, %v737_v57  ;;  %v803_v41 = vmul.f32 1.442695, %v739_v35  ;;  %1273 = vpow2.f32 %v927_v58 }
 0x2ef   : > { %v1264_v32 = vpop.eup %1263  ;;  %v745_v51 = vsub.f32 %v1961_v53, %v1719_v16  ;;  %v807_v57 = vmul.f32 1.442695, %v741_v2  ;;  %1275 = vpow2.f32 %v827_v4  ;;  %v811_v35 = vmul.f32 1.442695, %v743_v36 }
 0x2f0   : > { %971 = vmatpush.bf16.msra.mxu0 %v945_v18  ;;  %v1266_v60 = vpop.eup %1265  ;;  %v943_v48 = vpack.c.bf16 %v1264_v32, %v1262_v33  ;;  %v764_v43 = vsub.f32 %v1535_v46, %v1749_v50  ;;  %1277 = vpow2.f32 %v831_v55  ;;  %v768_v33 = vsub.f32 %v1547_v52, %v1749_v50 }
 0x2f1   : > { %v1268_v14 = vpop.eup %1267  ;;  %1279 = vpow2.f32 %v803_v41  ;;  %v793_v2 = vsub.f32 %v1617_v25, %v1719_v16  ;;  %v815_v46 = vmul.f32 1.442695, %v745_v51  ;;  %v770_v20 = vsub.f32 %v1551_v54, %v1749_v50 }
 0x2f2   : > { %v1270_v18 = vpop.eup %1269  ;;  %v941_v32 = vpack.c.bf16 %v1268_v14, %v1266_v60  ;;  %1281 = vpow2.f32 %v807_v57  ;;  %v853_v21 = vmul.f32 1.442695, %v764_v43  ;;  %v795_v52 = vsub.f32 %v1625_v29, %v1719_v16 }
 0x2f3   : > { %v1272_v58 = vpop.eup %1271  ;;  %1283 = vpow2.f32 %v819_v39  ;;  %v907_v4 = vmul.f32 1.442695, %v791_v28  ;;  %v796_v45 = vsub.f32 %v1664_v63, %v1749_v50  ;;  %v861_v25 = vmul.f32 1.442695, %v768_v33 }
 0x2f4   : > { %972 = vmatpush.bf16.msra.mxu0 %v943_v48  ;;  %v1767_v59 = vpop.eup %1273  ;;  %1285 = vpow2.f32 %v823_v11  ;;  %v939_v55 = vpack.c.bf16 %v1272_v58, %v1270_v18  ;;  %v797_v54 = vsub.f32 %v1640_v38, %v1719_v16  ;;  %v911_v47 = vmul.f32 1.442695, %v793_v2 }
 0x2f5   : > { %v1276_v24 = vpop.eup %1275  ;;  %1287 = vpow2.f32 %v811_v35  ;;  %v798_v29 = vsub.f32 %v1686_v34, %v1749_v50  ;;  %v865_v41 = vmul.f32 1.442695, %v770_v20  ;;  %v799_v63 = vsub.f32 %v1656_v10, %v1719_v16 }
 0x2f6   : > { %v1278_v60 = vpop.eup %1277  ;;  %1289 = vpow2.f32 %v815_v46  ;;  %v915_v14 = vmul.f32 1.442695, %v795_v52  ;;  %v766_v38 = vsub.f32 %v1541_v49, %v1749_v50  ;;  %v917_v51 = vmul.f32 1.442695, %v796_v45 }
 0x2f7   : > { %v1775_v36 = vpop.eup %1279  ;;  %1291 = vpow2.f32 %v853_v21  ;;  %v937_v57 = vpack.c.bf16 %v1278_v60, %v1276_v24  ;;  %v919_v39 = vmul.f32 1.442695, %v797_v54  ;;  %v921_v28 = vmul.f32 1.442695, %v798_v29 }
 0x2f8   : > { %973 = vmatpush.bf16.msra.mxu0 %v941_v32  ;;  %v1779_v48 = vpop.eup %1281  ;;  %1293 = vpow2.f32 %v907_v4  ;;  %v760_v10 = vsub.f32 %v1525_v42, %v1749_v50  ;;  %v923_v18 = vmul.f32 1.442695, %v799_v63  ;;  %v762_v49 = vsub.f32 %v1529_v44, %v1749_v50  ;;  %v1803_v4 = vld [vmem:[#allocation2] sm:$0x77] }
 0x2f9   : > { %v1284_v53 = vpop.eup %1283  ;;  %1295 = vpow2.f32 %v861_v25  ;;  %v857_v35 = vmul.f32 1.442695, %v766_v38  ;;  %v802_v2 = vsub.f32 %v1712_v8, %v1749_v50  ;;  %v756_v42 = vsub.f32 %v1658_v37, %v1749_v50 }
 0x2fa   : > { %v1286_v43 = vpop.eup %1285  ;;  %1297 = vpow2.f32 %v911_v47  ;;  %v787_v44 = vsub.f32 %v1593_v13, %v1719_v16  ;;  %v758_v21 = vsub.f32 %v1679_v12, %v1749_v50  ;;  %v845_v52 = vmul.f32 1.442695, %v760_v10 }
 0x2fb   : > { %v1288_v34 = vpop.eup %1287  ;;  %1299 = vpow2.f32 %v865_v41  ;;  %v935_v32 = vpack.c.bf16 %v1286_v43, %v1284_v53  ;;  %v849_v24 = vmul.f32 1.442695, %v762_v49  ;;  %v929_v60 = vmul.f32 1.442695, %v802_v2  ;;  %v1962_v49 = vld [vmem:[#allocation11_spill] sm:$0xff]  ;;  %v1963_v2 = vld [vmem:[#allocation17_spill] sm:$0xff] }
 0x2fc   : > { %974 = vmatpush.bf16.msra.mxu0 %v939_v55  ;;  %v1290_v11 = vpop.eup %1289  ;;  %1301 = vpow2.f32 %v915_v14  ;;  %v789_v55 = vsub.f32 %v1601_v17, %v1719_v16  ;;  %v783_v12 = vsub.f32 %v1577_v3, %v1719_v16  ;;  %v752_v54 = vsub.f32 %v1627_v30, %v1749_v50 }
 0x2fd   : > { %v1787_v33 = vpop.eup %1291  ;;  %1303 = vpow2.f32 %v917_v51  ;;  %v933_v45 = vpack.c.bf16 %v1290_v11, %v1288_v34  ;;  %v837_v47 = vmul.f32 1.442695, %v756_v42  ;;  %v965_v29 = vunpack.c.l.b16 %v1803_v4 }
 0x2fe   : > { %v1791_v58 = vpop.eup %1293  ;;  %1305 = vpow2.f32 %v919_v39  ;;  %v785_v63 = vsub.f32 %v1585_v7, %v1719_v16  ;;  %v754_v17 = vsub.f32 %v1643_v40, %v1749_v50  ;;  %v841_v14 = vmul.f32 1.442695, %v758_v21 }
 0x2ff   : > { %v1296_v46 = vpop.eup %1295  ;;  %1307 = vpow2.f32 %v921_v28  ;;  %v899_v38 = vmul.f32 1.442695, %v787_v44  ;;  %v931_v30 = vpack.c.bf16 %v1779_v48, %v1775_v36  ;;  %v748_v40 = vsub.f32 %v1611_v22, %v1749_v50  ;;  %v1964_v44 = vld [vmem:[#allocation19_spill] sm:$0xff] }
 0x300   : > { %975 = vmatpush.bf16.msra.mxu0 %v937_v57  ;;  %v1797_v20 = vpop.eup %1297  ;;  %1309 = vpow2.f32 %v923_v18  ;;  %v903_v57 = vmul.f32 1.442695, %v789_v55  ;;  %v829_v34 = vmul.f32 1.442695, %v752_v54  ;;  %v750_v11 = vsub.f32 %v1619_v26, %v1749_v50  ;;  %v1966_v55 = vld [vmem:[#allocation9_spill] sm:$0xff] }
 0x301   : > { %v1300_v8 = vpop.eup %1299  ;;  %1311 = vpow2.f32 %v857_v35  ;;  %v957_v37 = vpack.c.bf16 %v1797_v20, %v1791_v58  ;;  %v833_v36 = vmul.f32 1.442695, %v754_v17  ;;  %v1831_v48 = vpack.c.b16 %v965_v29, %v965_v29  ;;  %v1967_v29 = vld [vmem:[#allocation13_spill] sm:$0xff] }
 0x302   : > { %v1302_v25 = vpop.eup %1301  ;;  %1313 = vpow2.f32 %v845_v52  ;;  %v946_v43 = vpack.c.bf16 %v1300_v8, %v1296_v46  ;;  %v779_v10 = vsub.f32 %v1565_v61, %v1719_v16  ;;  %v891_v18 = vmul.f32 1.442695, %v783_v12 }
 0x303   : > { %v1809_v13 = vpop.eup %1303  ;;  %1315 = vpow2.f32 %v849_v24  ;;  %v781_v35 = vsub.f32 %v1962_v49, %v1719_v16  ;;  %v744_v46 = vsub.f32 %v1963_v2, %v1749_v50  ;;  %v821_v42 = vmul.f32 1.442695, %v748_v40  ;;  %v1965_v24 = vld [vmem:[#allocation7_spill] sm:$0xff]  ;;  %v1970_v40 = vld [vmem:[#allocation6_spill] sm:$0xff] }
 0x304   : > { %976 = vmatpush.bf16.msra.mxu0 %v935_v32  ;;  %v1306_v41 = vpop.eup %1305  ;;  %1317 = vpow2.f32 %v929_v60  ;;  %v746_v21 = vsub.f32 %v1964_v44, %v1749_v50  ;;  %v825_v52 = vmul.f32 1.442695, %v750_v11  ;;  %v777_v60 = vsub.f32 %v1966_v55, %v1719_v16 }
 0x305   : > { %v1820_v53 = vpop.eup %1307  ;;  %v959_v3 = vpack.c.bf16 %v1306_v41, %v1302_v25  ;;  %1319 = vpow2.f32 %v837_v47  ;;  %v883_v25 = vmul.f32 1.442695, %v779_v10  ;;  %v887_v12 = vmul.f32 1.442695, %v781_v35 }
 0x306   : > { %v1310_v51 = vpop.eup %1309  ;;  %v960_v7 = vpack.c.bf16 %v1820_v53, %v1809_v13  ;;  %1321 = vpow2.f32 %v841_v14  ;;  %v740_v41 = vsub.f32 %v1967_v29, %v1749_v50  ;;  %v1968_v14 = vld [vmem:[#allocation15_spill] sm:$0xff]  ;;  %v800_v10 = vsub.f32 %v1700_v0, %v1749_v50 }
 0x307   : > { %v1312_v39 = vpop.eup %1311  ;;  %v961_v28 = vpack.c.bf16 %v1767_v59, %v1310_v51  ;;  %1323 = vpow2.f32 %v899_v38  ;;  %v895_v59 = vmul.f32 1.442695, %v785_v63  ;;  %v813_v63 = vmul.f32 1.442695, %v744_v46  ;;  %v1969_v51 = vld [vmem:[#allocation5_spill] sm:$0xff] }
 0x308   : > { %977 = vmatpush.bf16.msra.mxu0 %v933_v45  ;;  %v1314_v22 = vpop.eup %1313  ;;  %1325 = vpow2.f32 %v903_v57  ;;  %v944_v26 = vpack.c.bf16 %v1312_v39, %v1787_v33  ;;  %v775_v45 = vsub.f32 %v1965_v24, %v1719_v16  ;;  %v742_v38 = vsub.f32 %v1968_v14, %v1749_v50 }
 0x309   : > { %984 = vmatpush.bf16.msra.mxu1 %v961_v28  ;;  %v1316_v32 = vpop.eup %1315  ;;  %1327 = vpow2.f32 %v829_v34  ;;  %v771_v57 = vsub.f32 %v1969_v51, %v1719_v16  ;;  %v773_v34 = vsub.f32 %v1970_v40, %v1719_v16  ;;  %v879_v28 = vmul.f32 1.442695, %v777_v60  ;;  %v1971_v51 = vld [vmem:[#allocation3_spill] sm:$0xff] }
 0x30a   : > { %v1841_v61 = vpop.eup %1317  ;;  %1329 = vpow2.f32 %v833_v36  ;;  %v942_v54 = vpack.c.bf16 %v1316_v32, %v1314_v22  ;;  %v809_v35 = vmul.f32 1.442695, %v742_v38  ;;  %v925_v32 = vmul.f32 1.442695, %v800_v10 }
 0x30b   : > { %v1320_v8 = vpop.eup %1319  ;;  %1331 = vpow2.f32 %v891_v18  ;;  %v805_v18 = vmul.f32 1.442695, %v740_v41  ;;  %v867_v20 = vmul.f32 1.442695, %v771_v57  ;;  %v871_v16 = vmul.f32 1.442695, %v773_v34 }
 0x30c   : > { %978 = vmatpush.bf16.msra.mxu0 %v931_v30  ;;  %v1322_v33 = vpop.eup %1321  ;;  %1333 = vpow2.f32 %v895_v59  ;;  %v817_v30 = vmul.f32 1.442695, %v746_v21  ;;  %v792_v44 = vsub.f32 %v1629_v31, %v1749_v50  ;;  %v788_v55 = vsub.f32 %v1613_v23, %v1749_v50 }
 0x30d   : > { %985 = vmatpush.bf16.msra.mxu1 %v959_v3  ;;  %v1324_v47 = vpop.eup %1323  ;;  %1335 = vpow2.f32 %v821_v42  ;;  %v940_v11 = vpack.c.bf16 %v1322_v33, %v1320_v8  ;;  %v794_v8 = vsub.f32 %v1648_v6, %v1749_v50  ;;  %v790_v31 = vsub.f32 %v1621_v27, %v1749_v50 }
 0x30e   : > { %v1326_v17 = vpop.eup %1325  ;;  %1337 = vpow2.f32 %v825_v52  ;;  %v909_v60 = vmul.f32 1.442695, %v792_v44  ;;  %v901_v14 = vmul.f32 1.442695, %v788_v55  ;;  %v786_v38 = vsub.f32 %v1605_v19, %v1749_v50 }
 0x30f   : > { %979 = vmatmul.bf16.vlgmr.msra.gmra.mxu0 %v1831_v48  ;;  %v1328_v3 = vpop.eup %1327  ;;  %1339 = vpow2.f32 %v883_v25  ;;  %v955_v22 = vpack.c.bf16 %v1326_v17, %v1324_v47  ;;  %v913_v47 = vmul.f32 1.442695, %v794_v8  ;;  %v784_v17 = vsub.f32 %v1597_v15, %v1749_v50 }
 0x310   : > { %997 = vmatpush.bf16.msrb.mxu0 %v946_v43  ;;  %v875_v43 = vmul.f32 1.442695, %v775_v45  ;;  %v1330_v39 = vpop.eup %1329  ;;  %1341 = vpow2.f32 %v887_v12  ;;  %v897_v19 = vmul.f32 1.442695, %v786_v38  ;;  %v776_v40 = vsub.f32 %v1567_v62, %v1749_v50  ;;  %v1972_v62 = vld [vmem:[#allocation8_spill] sm:$0xff] }
 0x311   : > { %986 = vmatpush.bf16.msra.mxu1 %v957_v37  ;;  %v1332_v36 = vpop.eup %1331  ;;  %1343 = vpow2.f32 %v813_v63  ;;  %v938_v59 = vpack.c.bf16 %v1330_v39, %v1328_v3  ;;  %v966_v63 = vunpack.c.h.b16 %v1803_v4  ;;  %v780_v4 = vsub.f32 %v1581_v5, %v1749_v50 }
 0x312   : > { %v1334_v49 = vpop.eup %1333  ;;  %1345 = vpow2.f32 %v817_v30  ;;  %v905_v30 = vmul.f32 1.442695, %v790_v31  ;;  %v893_v57 = vmul.f32 1.442695, %v784_v17  ;;  %v778_v5 = vsub.f32 %v1573_v1, %v1749_v50  ;;  %v1025_v1 = vld [vmem:[%s1920_s4] sm:$0xf] }
 0x313   : > { %v1336_v58 = vpop.eup %1335  ;;  %1347 = vpow2.f32 %v875_v43  ;;  %v953_v2 = vpack.c.bf16 %v1334_v49, %v1332_v36  ;;  %v968_v15 = vpack.c.b16 %v966_v63, %v966_v63  ;;  %v782_v43 = vsub.f32 %v1589_v9, %v1749_v50 }
 0x314   : > { %998 = vmatpush.bf16.msrb.mxu0 %v944_v26  ;;  %v1338_v37 = vpop.eup %1337  ;;  %1349 = vpow2.f32 %v879_v28  ;;  %v885_v34 = vmul.f32 1.442695, %v780_v4  ;;  %v772_v36 = vsub.f32 %v1555_v56, %v1749_v50  ;;  %v877_v10 = vmul.f32 1.442695, %v776_v40 }
 0x315   : > { %987 = vmatpush.bf16.msra.mxu1 %v955_v22  ;;  %v1340_v26 = vpop.eup %1339  ;;  %1351 = vpow2.f32 %v805_v18  ;;  %v936_v21 = vpack.c.bf16 %v1338_v37, %v1336_v58  ;;  %v889_v9 = vmul.f32 1.442695, %v782_v43  ;;  %v774_v18 = vsub.f32 %v1972_v62, %v1749_v50  ;;  %v1027_v50 = vld [vmem:[%s1921_s5] sm:$0xf] }
 0x316   : > { %v1342_v0 = vpop.eup %1341  ;;  %1353 = vpow2.f32 %v809_v35  ;;  %v881_v22 = vmul.f32 1.442695, %v778_v5  ;;  %v869_v49 = vmul.f32 1.442695, %v772_v36  ;;  %v1026_v56 = vpack.c.bf16 %v1025_v1, %v1025_v1  ;;  %1030 = vperm.xlu1 %1256, %v1027_v50  }
 0x317   : > { %v1344_v46 = vpop.eup %1343  ;;  %1355 = vpow2.f32 %v867_v20  ;;  %v951_v24 = vpack.c.bf16 %v1342_v0, %v1340_v26  ;;  %v873_v35 = vmul.f32 1.442695, %v774_v18 }
 0x318   : > { %999 = vmatpush.bf16.msrb.mxu0 %v942_v54  ;;  %v1346_v42 = vpop.eup %1345  ;;  %1357 = vpow2.f32 %v871_v16 }
 0x319   : > { %988 = vmatpush.bf16.msra.mxu1 %v953_v2  ;;  %v1348_v52 = vpop.eup %1347  ;;  %1359 = vpow2.f32 %v925_v32  ;;  %v934_v12 = vpack.c.bf16 %v1346_v42, %v1344_v46  ;;  %v1973_v42 = vld [vmem:[#allocation4_spill] sm:$0xff] }
 0x31a   : > { %v1350_v45 = vpop.eup %1349  ;;  %1361 = vpow2.f32 %v909_v60 }
 0x31b   : > { %v1352_v25 = vpop.eup %1351  ;;  %v949_v29 = vpack.c.bf16 %v1350_v45, %v1348_v52  ;;  %1363 = vpow2.f32 %v913_v47 }
 0x31c   : > { %1000 = vmatpush.bf16.msrb.mxu0 %v940_v11  ;;  %v1354_v33 = vpop.eup %1353  ;;  %1365 = vpow2.f32 %v901_v14 }
 0x31d   : > { %989 = vmatpush.bf16.msra.mxu1 %v951_v24  ;;  %v1356_v54 = vpop.eup %1355  ;;  %v932_v23 = vpack.c.bf16 %v1354_v33, %v1352_v25  ;;  %1367 = vpow2.f32 %v905_v30 }
 0x31e   : > { %v1358_v41 = vpop.eup %1357  ;;  %1369 = vpow2.f32 %v893_v57 }
 0x31f   : > { %v1360_v6 = vpop.eup %1359  ;;  %v947_v27 = vpack.c.bf16 %v1358_v41, %v1356_v54  ;;  %1371 = vpow2.f32 %v897_v19 }
 0x320   : > { %1001 = vmatpush.bf16.msrb.mxu0 %v938_v59  ;;  %v962_v3 = vpack.c.bf16 %v1841_v61, %v1360_v6  ;;  %v1362_v39 = vpop.eup %1361  ;;  %1373 = vpow2.f32 %v885_v34 }
 0x321   : > { %990 = vmatpush.bf16.msra.mxu1 %v949_v29  ;;  %v1364_v61 = vpop.eup %1363  ;;  %1375 = vpow2.f32 %v889_v9 }
 0x322   : > { %v1366_v28 = vpop.eup %1365  ;;  %v958_v11 = vpack.c.bf16 %v1364_v61, %v1362_v39  ;;  %1377 = vpow2.f32 %v877_v10 }
 0x323   : > { %1379 = vpow2.f32 %v881_v22 }
 0x324   : > { %1002 = vmatpush.bf16.msrb.mxu0 %v936_v21  ;;  %1381 = vpow2.f32 %v869_v49 }
 0x325   : > { %991 = vmatpush.bf16.msra.mxu1 %v947_v27  ;;  %1383 = vpow2.f32 %v873_v35 }
 0x328   : > { %1003 = vmatpush.bf16.msrb.mxu0 %v934_v12  ;;  %992 = vmatmul.bf16.vlgmr.msra.gmra.mxu1 %v968_v15 }
 0x329   : > { %1010 = vmatpush.bf16.msrb.mxu1 %v962_v3 }
 0x32c   : > { %1004 = vmatpush.bf16.msrb.mxu0 %v932_v23 }
 0x32d   : > { %1011 = vmatpush.bf16.msrb.mxu1 %v960_v7 }
 0x32f   : > { %1005 = vmatmul.bf16.vlgmr.msrb.gmra.mxu0 %v1831_v48  ;;  %v1368_v48 = vpop.eup %1367 }
 0x330   : > { %1043 = vmatpush.bf16.msra.mxu0 %v1971_v51  ;;  %v1370_v13 = vpop.eup %1369  ;;  %v956_v53 = vpack.c.bf16 %v1368_v48, %v1366_v28 }
 0x331   : > { %1012 = vmatpush.bf16.msrb.mxu1 %v958_v11  ;;  %v1372_v7 = vpop.eup %1371 }
 0x332   : > { %v1374_v58 = vpop.eup %1373  ;;  %v954_v20 = vpack.c.bf16 %v1372_v7, %v1370_v13 }
 0x333   : > { %v1376_v37 = vpop.eup %1375 }
 0x334   : > { %v1378_v16 = vpop.eup %1377  ;;  %v952_v59 = vpack.c.bf16 %v1376_v37, %v1374_v58 }
 0x335   : > { %1013 = vmatpush.bf16.msrb.mxu1 %v956_v53  ;;  %v1380_v26 = vpop.eup %1379 }
 0x336   : > { %v1382_v32 = vpop.eup %1381  ;;  %v950_v2 = vpack.c.bf16 %v1380_v26, %v1378_v16 }
 0x337   : > { %v1384_v0 = vpop.eup %1383 }
 0x338   : > { %v948_v46 = vpack.c.bf16 %v1384_v0, %v1382_v32 }
 0x339   : > { %1014 = vmatpush.bf16.msrb.mxu1 %v954_v20 }
 0x33d   : > { %1015 = vmatpush.bf16.msrb.mxu1 %v952_v59 }
 0x33f   : > { %1221 = vmatmul.msk.bf16.vlgmr.msra.gmra.mxu0 %vm329_vm1, %v1026_v56 }
 0x341   : > { %1016 = vmatpush.bf16.msrb.mxu1 %v950_v2 }
 0x345   : > { %1017 = vmatpush.bf16.msrb.mxu1 %v948_v46 }
 0x348   : > { %1018 = vmatmul.bf16.vlgmr.msrb.gmra.mxu1 %v968_v15 }
 0x349   : > { %1056 = vmatpush.bf16.msra.mxu1 %v1973_v42 }
 0x358   : > { %1222 = vmatmul.msk.bf16.vlgmr.msra.gmra.mxu1 %vm329_vm1, %v1026_v56 }
 0x388   : > { %v1031_v41 = vpop.permute.xlu1 %1030 }
 0x38c   : > { %v980_v44 = vpop.f32.mrf.mxu0 }
 0x394   : > { %v982_v21 = vpop.f32.mrf.mxu0 }
 0x3a5   : > { %v993_v8 = vpop.f32.mrf.mxu1 }
 0x3a6   : > { %v994_v12 = vadd.f32 %v993_v8, %v980_v44 }
 0x3ac   : > { %v1006_v52 = vpop.f32.mrf.mxu0 }
 0x3ad   : > { %v995_v45 = vpop.f32.mrf.mxu1 }
 0x3b4   : > { %v1008_v24 = vpop.f32.mrf.mxu0 }
 0x3bc   : > { %v1045_v25 = vpop.f32.mrf.mxu0 }
 0x3bd   : > { %v1046_v14 = vadd.f32 %v1045_v25, %v1031_v41 }
 0x3c4   : > { %v1047_v33 = vpop.f32.mrf.mxu0 }
 0x3c5   : > { %v1019_v55 = vpop.f32.mrf.mxu1 }
 0x3c6   : > { %v1020_v60 = vadd.f32 %v1019_v55, %v1006_v52 }
 0x3c8   : > { %1385 = vrcp.f32 %v1020_v60 }
 0x3c9   : > { %1387 = vrcp.f32 %v994_v12 }
 0x3cd   : > { %v1021_v54 = vpop.f32.mrf.mxu1 }
 0x3ce   : > { %v1386_v31 = vpop.eup %1385 }
 0x3cf   : > { %v1388_v47 = vpop.eup %1387  ;;  %v1063_v29 = vperm.slane %v1386_v31, 4 }
 0x3d0   : > { %v1062_v6 = vperm.slane %v1388_v47, 4 }
 0x3d1   : > { %v1065_v17 = vmul.f32 %v1063_v29, %v1020_v60 }
 0x3d2   : > { %v1064_v38 = vmul.f32 %v1062_v6, %v994_v12 }
 0x3d4   : > { %v1066_v27 = vadd.f32 %v1064_v38, %v1046_v14 }
 0x3d5   : > { %v1058_v63 = vpop.f32.mrf.mxu1 }
 0x3d6   : > { %v1059_v23 = vadd.f32 %v1058_v63, %v1031_v41 }
 0x3d8   : > { %v1067_v30 = vadd.f32 %v1065_v17, %v1059_v23 }
 0x3da   : > { %v1070_v3 = vrot.slane %v1067_v30, 4 }
 0x3dc   : > { %v1072_v51 = vsel %vm333_vm0, %v1066_v27, %v1070_v3 }
 0x3dd   : > { %1074 = vst [vmem:[%s309_s18] sm:$0xff] %v1072_v51  ;;  %v1060_v4 = vpop.f32.mrf.mxu1 }
 0x3de PF: > { %s16_s23 = sadd.s32 1, %s1411_s23   ;;  %s1974_s21 = smov %s1407_s22 }
 0x3df   : > { %p13_p5 = scmp.ge.s32.totalorder %s16_s23, 4   ;;  %s1975_s22 = smov %s1977_s24 }
 0x3e1   :  { %15 = sbr.rel (!%p13_p5) target bundleno = 2 (0x2), region = 81 }

</bundles_post_ra>
